<compile_context>
chip_gen: v7x
topology: tpu7x:2x2x1
jax: 0.10.0
libtpu: 0.0.40
codegen_flags: <defaults>
</compile_context>

<pallas_src>
import jax
import jax.numpy as jnp
from jax.experimental import pallas as pl
from jax.experimental.pallas import tpu as pltpu


def _round_up(x, m):
    return ((x + m - 1) // m) * m


# ----------------------------- Pallas kernel ------------------------------- #
def _lsa_kernel(patch_ref, annot_ref, wl_ref, wa_ref, q_ref, v_ref, out_ref):
    # patch_ref : (1, TILE, P_pad)  bf16  im2col'd location patches
    # annot_ref : (1, TILE, D_pad)  bf16  encoder annotations
    # wl_ref    : (P_pad, A_pad)    bf16  conv->loc_linear fused weight (resident)
    # wa_ref    : (D_pad, A_pad)    bf16  annot_layer weight (resident)
    # q_ref     : (1, 1, A_pad)     f32   query projection + all biases (per batch)
    # v_ref     : (1, A_pad)        f32   v vector
    # out_ref   : (1, 1, TILE)      f32   alignment scores, lane-dense
    pre = jnp.dot(patch_ref[0], wl_ref[...], preferred_element_type=jnp.float32)
    pre = pre + jnp.dot(annot_ref[0], wa_ref[...], preferred_element_type=jnp.float32)
    e = jnp.tanh(pre + q_ref[0])                       # (TILE, A_pad), f32
    align = jnp.sum(e * v_ref[...], axis=-1)           # VPU mul + lane reduce
    out_ref[...] = align[None, None, :]                # lane-dense store


# ------------------------------ JAX wrapper -------------------------------- #
def location_sensitive_attention(annot, query, loc, params, kernel_size=31):
    B, T, annot_dim = annot.shape
    if query.ndim == 3:                 # (B, 1, Q) -> (B, Q)
        query = query[:, 0, :]

    K = kernel_size
    pad = (K - 1) // 2

    # --- im2col for the 1D conv (gather/reshape only; channel-major, k-minor
    #     flattening matches conv_w.reshape(F, 2K)) ---
    loc_pad = jnp.pad(loc, ((0, 0), (0, 0), (pad, pad)))           # (B, 2, T+2p)
    idx = jnp.arange(T)[:, None] + jnp.arange(K)[None, :]          # (T, K)
    patches = loc_pad[:, :, idx]                                   # (B, 2, T, K)
    patches = patches.transpose(0, 2, 1, 3).reshape(B, T, 2 * K)   # (B, T, 2K)
    # TODO(synk): in-kernel im2col (resident per-batch (2, T+2p) slab + shifted
    # slices) would cut the location-branch HBM read ~Kx; left in the wrapper.

    # --- fold conv + loc_linear into one weight; annot weight stays separate ---
    F_filt = params["conv_w"].shape[0]
    wc = params["conv_w"].reshape(F_filt, 2 * K).T                 # (2K, F)
    w_loc = wc @ params["loc_w"].T                                 # (2K, A)
    w_ann = params["a_w"].T                                        # (D, A)
    A = w_ann.shape[1]

    # --- hoist query projection; fold ALL biases into it (per-batch, tiny) ---
    proc_q = (query @ params["q_w"].T
              + (params["q_b"] + params["loc_b"] + params["a_b"]))  # (B, A)

    # --- lane-dense zero padding to multiples of 128 ---
    P = 2 * K
    P_pad = _round_up(P, 128)
    D_pad = _round_up(annot_dim, 128)
    A_pad = _round_up(A, 128)

    # Up to 1024 time rows per tile: bf16 tiles are tiny (<1 MiB double-buffered)
    # so this fits every generation's VMEM, and big tiles amortize the ~0.35 us
    # per-grid-step overhead (HBM-bound regime).
    TILE = min(1024, _round_up(T, 128))
    T_pad = _round_up(T, TILE)
    num_t = T_pad // TILE

    patches_p = jnp.pad(
        patches, ((0, 0), (0, T_pad - T), (0, P_pad - P))).astype(jnp.bfloat16)
    annot_p = jnp.pad(
        annot, ((0, 0), (0, T_pad - T), (0, D_pad - annot_dim))).astype(jnp.bfloat16)
    W_loc = jnp.pad(w_loc, ((0, P_pad - P), (0, A_pad - A))).astype(jnp.bfloat16)
    W_ann = jnp.pad(w_ann, ((0, D_pad - annot_dim), (0, A_pad - A))).astype(jnp.bfloat16)
    Q = jnp.pad(proc_q, ((0, 0), (0, A_pad - A))).astype(jnp.float32)[:, None, :]
    v = jnp.pad(params["v_w"], ((0, 0), (0, A_pad - A))).astype(jnp.float32)

    cost = pl.CostEstimate(
        flops=int(2 * B * T_pad * (P_pad + D_pad) * A_pad + 4 * B * T_pad * A_pad),
        transcendentals=int(B * T_pad * A_pad),
        bytes_accessed=int(
            2 * B * T_pad * (P_pad + D_pad)          # bf16 patches + annot reads
            + 2 * (P_pad + D_pad) * A_pad            # bf16 resident weights
            + 4 * (B * A_pad + A_pad)                # f32 query rows + v
            + 4 * B * T_pad),                        # f32 output
    )

    out = pl.pallas_call(
        _lsa_kernel,
        out_shape=jax.ShapeDtypeStruct((B, 1, T_pad), jnp.float32),
        grid=(B, num_t),
        in_specs=[
            pl.BlockSpec((1, TILE, P_pad), lambda b, t: (b, t, 0)),   # patches
            pl.BlockSpec((1, TILE, D_pad), lambda b, t: (b, t, 0)),   # annot
            pl.BlockSpec((P_pad, A_pad), lambda b, t: (0, 0)),        # W_loc (resident)
            pl.BlockSpec((D_pad, A_pad), lambda b, t: (0, 0)),        # W_ann (resident)
            pl.BlockSpec((1, 1, A_pad), lambda b, t: (b, 0, 0)),      # proc_q (+biases)
            pl.BlockSpec((1, A_pad), lambda b, t: (0, 0)),            # v
        ],
        out_specs=pl.BlockSpec((1, 1, TILE), lambda b, t: (b, 0, t)),
        compiler_params=pltpu.CompilerParams(
            dimension_semantics=("parallel", "parallel")),
        cost_estimate=cost,
    )(patches_p, annot_p, W_loc, W_ann, Q, v)

    return out[:, 0, :T]                                            # (B, T)


# --------------------------- pure-JAX reference ----------------------------- #
def reference(annot, query, loc, params, kernel_size=31):
    if query.ndim == 2:
        query = query[:, None, :]
    pad = (kernel_size - 1) // 2
    conv = jax.lax.conv_general_dilated(
        loc, params["conv_w"], window_strides=(1,), padding=[(pad, pad)],
        dimension_numbers=("NCH", "OIH", "NCH"))                    # (B, F, T)
    conv = conv.transpose(0, 2, 1)                                  # (B, T, F)
    proc_loc = conv @ params["loc_w"].T + params["loc_b"]
    proc_q = query @ params["q_w"].T + params["q_b"]
    proc_a = annot @ params["a_w"].T + params["a_b"]
    e = jnp.tanh(proc_q + proc_a + proc_loc)
    return (e @ params["v_w"].T)[..., 0]                            # (B, T)


# --------------------------------- main ------------------------------------ #
if __name__ == "__main__":
    B, T = 2, 16
    annot_dim, query_dim, attn_dim = 32, 24, 32
    kernel_size, filters = 31, 32

    key = jax.random.PRNGKey(0)
    k = jax.random.split(key, 12)

    def u(kk, shape, scale=0.1):
        return jax.random.uniform(kk, shape, jnp.float32, -scale, scale)

    params = {
        "conv_w": u(k[0], (filters, 2, kernel_size)),   # Conv1d weight (O, I, K), no bias
        "loc_w":  u(k[1], (attn_dim, filters)),         # Linear(filters, attn_dim)
        "loc_b":  u(k[2], (attn_dim,)),
        "q_w":    u(k[3], (attn_dim, query_dim)),       # Linear(query_dim, attn_dim)
        "q_b":    u(k[4], (attn_dim,)),
        "a_w":    u(k[5], (attn_dim, annot_dim)),       # Linear(annot_dim, attn_dim)
        "a_b":    u(k[6], (attn_dim,)),
        "v_w":    u(k[7], (1, attn_dim)),               # Linear(attn_dim, 1, bias=False)
    }

    annot = jax.random.normal(k[8], (B, T, annot_dim), jnp.float32)
    query = jax.random.normal(k[9], (B, query_dim), jnp.float32)    # (B, dim) branch
    loc = jax.random.normal(k[10], (B, 2, T), jnp.float32)

    out = location_sensitive_attention(annot, query, loc, params, kernel_size)
    out = jax.block_until_ready(out)

    ref = reference(annot, query, loc, params, kernel_size)
    assert out.shape == (B, T), out.shape
    # bf16 MXU operands: tolerance relaxed vs. the pure-f32 reference.
    assert jnp.allclose(out, ref, atol=1e-2, rtol=1e-2), \
        f"max abs err {jnp.max(jnp.abs(out - ref))}"

    print("KERNEL_OK")
</pallas_src>

<mosaic_0001>
module attributes {stable_mosaic.version = 11 : i64} {
  func.func @_lsa_kernel(%arg0: i32, %arg1: i32, %arg2: memref<1x128x128xbf16, #tpu.memory_space<vmem>>, %arg3: memref<1x128x128xbf16, #tpu.memory_space<vmem>>, %arg4: memref<128x128xbf16, #tpu.memory_space<vmem>>, %arg5: memref<128x128xbf16, #tpu.memory_space<vmem>>, %arg6: memref<1x1x128xf32, #tpu.memory_space<vmem>>, %arg7: memref<1x128xf32, #tpu.memory_space<vmem>>, %arg8: memref<1x1x128xf32, #tpu.memory_space<vmem>>) attributes {dimension_semantics = [#tpu.dimension_semantics<parallel>, #tpu.dimension_semantics<parallel>], iteration_bounds = array<i64: 2, 1>, scalar_prefetch = 0 : i64, scratch_operands = 0 : i64, tpu.core_type = #tpu.core_type<tc>, window_params = [{transform_indices = @transform_0, window_bounds = array<i64: 1, 128, 128>}, {transform_indices = @transform_1, window_bounds = array<i64: 1, 128, 128>}, {pipeline_mode = #tpu.pipeline_mode<synchronous>, transform_indices = @transform_2, window_bounds = array<i64: 128, 128>}, {pipeline_mode = #tpu.pipeline_mode<synchronous>, transform_indices = @transform_3, window_bounds = array<i64: 128, 128>}, {transform_indices = @transform_4, window_bounds = array<i64: 1, 1, 128>}, {pipeline_mode = #tpu.pipeline_mode<synchronous>, transform_indices = @transform_5, window_bounds = array<i64: 1, 128>}, {transform_indices = @transform_6, window_bounds = array<i64: 1, 1, 128>}]} {
    %c0 = arith.constant 0 : index
    %c0_0 = arith.constant 0 : index
    %c0_1 = arith.constant 0 : index
    %0 = vector.load %arg2[%c0, %c0_0, %c0_1] : memref<1x128x128xbf16, #tpu.memory_space<vmem>>, vector<1x128x128xbf16>
    %1 = vector.shape_cast %0 : vector<1x128x128xbf16> to vector<128x128xbf16>
    %c0_2 = arith.constant 0 : index
    %c0_3 = arith.constant 0 : index
    %2 = vector.load %arg4[%c0_2, %c0_3] : memref<128x128xbf16, #tpu.memory_space<vmem>>, vector<128x128xbf16>
    %cst = arith.constant dense<0.000000e+00> : vector<128x128xf32>
    %3 = tpu.matmul %1, %2, %cst {dimension_numbers = #tpu.dot_dimension_numbers<[1], [0], [0], [1], [0, 0, 1, 1], [], []>} : vector<128x128xbf16>, vector<128x128xbf16>, vector<128x128xf32> -> vector<128x128xf32>
    %c0_4 = arith.constant 0 : index
    %c0_5 = arith.constant 0 : index
    %c0_6 = arith.constant 0 : index
    %4 = vector.load %arg3[%c0_4, %c0_5, %c0_6] : memref<1x128x128xbf16, #tpu.memory_space<vmem>>, vector<1x128x128xbf16>
    %5 = vector.shape_cast %4 : vector<1x128x128xbf16> to vector<128x128xbf16>
    %c0_7 = arith.constant 0 : index
    %c0_8 = arith.constant 0 : index
    %6 = vector.load %arg5[%c0_7, %c0_8] : memref<128x128xbf16, #tpu.memory_space<vmem>>, vector<128x128xbf16>
    %cst_9 = arith.constant dense<0.000000e+00> : vector<128x128xf32>
    %7 = tpu.matmul %5, %6, %cst_9 {dimension_numbers = #tpu.dot_dimension_numbers<[1], [0], [0], [1], [0, 0, 1, 1], [], []>} : vector<128x128xbf16>, vector<128x128xbf16>, vector<128x128xf32> -> vector<128x128xf32>
    %8 = arith.addf %3, %7 : vector<128x128xf32>
    %c0_10 = arith.constant 0 : index
    %c0_11 = arith.constant 0 : index
    %c0_12 = arith.constant 0 : index
    %9 = vector.load %arg6[%c0_10, %c0_11, %c0_12] : memref<1x1x128xf32, #tpu.memory_space<vmem>>, vector<1x1x128xf32>
    %10 = vector.shape_cast %9 : vector<1x1x128xf32> to vector<1x128xf32>
    %11 = vector.broadcast %10 : vector<1x128xf32> to vector<128x128xf32>
    %12 = arith.addf %8, %11 : vector<128x128xf32>
    %13 = math.tanh %12 : vector<128x128xf32>
    %c0_13 = arith.constant 0 : index
    %c0_14 = arith.constant 0 : index
    %14 = vector.load %arg7[%c0_13, %c0_14] : memref<1x128xf32, #tpu.memory_space<vmem>>, vector<1x128xf32>
    %15 = vector.broadcast %14 : vector<1x128xf32> to vector<128x128xf32>
    %16 = arith.mulf %13, %15 : vector<128x128xf32>
    %cst_15 = arith.constant dense<0.000000e+00> : vector<128xf32>
    %17 = vector.multi_reduction <add>, %16, %cst_15 [1] : vector<128x128xf32> to vector<128xf32>
    %18 = vector.shape_cast %17 : vector<128xf32> to vector<1x1x128xf32>
    %c0_16 = arith.constant 0 : index
    %c0_17 = arith.constant 0 : index
    %c0_18 = arith.constant 0 : index
    %19 = vector.load %arg8[%c0_16, %c0_17, %c0_18] : memref<1x1x128xf32, #tpu.memory_space<vmem>>, vector<1x1x128xf32>
    tpu.vector_store %arg8[%c0_16, %c0_17, %c0_18], %18 {strides = array<i32>} : memref<1x1x128xf32, #tpu.memory_space<vmem>>, vector<1x1x128xf32>,
    return
  }
  func.func @transform_0(%arg0: i32, %arg1: i32) -> (i32, i32, i32) {
    %c0_i32 = arith.constant 0 : i32
    %c0_i32_0 = arith.constant 0 : i32
    return %arg0, %arg1, %c0_i32 : i32, i32, i32
  }
  func.func @transform_1(%arg0: i32, %arg1: i32) -> (i32, i32, i32) {
    %c0_i32 = arith.constant 0 : i32
    %c0_i32_0 = arith.constant 0 : i32
    return %arg0, %arg1, %c0_i32 : i32, i32, i32
  }
  func.func @transform_2(%arg0: i32, %arg1: i32) -> (i32, i32) {
    %c0_i32 = arith.constant 0 : i32
    %c0_i32_0 = arith.constant 0 : i32
    %c0_i32_1 = arith.constant 0 : i32
    return %c0_i32, %c0_i32_0 : i32, i32
  }
  func.func @transform_3(%arg0: i32, %arg1: i32) -> (i32, i32) {
    %c0_i32 = arith.constant 0 : i32
    %c0_i32_0 = arith.constant 0 : i32
    %c0_i32_1 = arith.constant 0 : i32
    return %c0_i32, %c0_i32_0 : i32, i32
  }
  func.func @transform_4(%arg0: i32, %arg1: i32) -> (i32, i32, i32) {
    %c0_i32 = arith.constant 0 : i32
    %c0_i32_0 = arith.constant 0 : i32
    %c0_i32_1 = arith.constant 0 : i32
    return %arg0, %c0_i32, %c0_i32_0 : i32, i32, i32
  }
  func.func @transform_5(%arg0: i32, %arg1: i32) -> (i32, i32) {
    %c0_i32 = arith.constant 0 : i32
    %c0_i32_0 = arith.constant 0 : i32
    %c0_i32_1 = arith.constant 0 : i32
    return %c0_i32, %c0_i32_0 : i32, i32
  }
  func.func @transform_6(%arg0: i32, %arg1: i32) -> (i32, i32, i32) {
    %c0_i32 = arith.constant 0 : i32
    %c0_i32_0 = arith.constant 0 : i32
    return %arg0, %c0_i32, %arg1 : i32, i32, i32
  }
}

</mosaic_0001>

<bundles_post_ra>
// kernel: tpu_custom_call.1
= control target key start
LH: loop header
LB: loop body
LE: loop exit
PB: predicated region body
PF: predicated region fallthrough
CT: control target
= control target key end

     0   :  { %s2181_s0 = inlined_call_operand.hbm [shape: bf16[2,128,128], index: 0, kind: input, shape index: {}]   ;;  %s2182_s1 = inlined_call_operand.hbm [shape: bf16[2,128,128], index: 1, kind: input, shape index: {}]   ;;  %s2183_s2 = inlined_call_operand.hbm [shape: bf16[128,128], index: 2, kind: input, shape index: {}]   ;;  %s2184_s3 = inlined_call_operand.hbm [shape: bf16[128,128], index: 3, kind: input, shape index: {}]   ;;  %s2185_s4 = inlined_call_operand.vmem [shape: f32[2,1,128], index: 4, kind: input, shape index: {}]   ;;  %s2186_s5 = inlined_call_operand.vmem [shape: f32[1,128], index: 5, kind: input, shape index: {}]   ;;  %s2187_s6 = inlined_call_operand.hbm [shape: f32[2,1,128], index: 6, kind: output, shape index: {}]  }
   0x1   :  { %2198 = sst [smem:[#allocation20_spill]] %s2181_s0 }
   0x2   :  { %2199 = sst [smem:[#allocation21_spill]] %s2183_s2 }
   0x3   :  { %2200 = sst [smem:[#allocation22_spill]] %s2184_s3 }
   0x4   :  { %11 = vsyncpa [#allocation3], 0 }
   0x5   :  { %13 = vsyncpa [#allocation3 + $0x1], 0 }
   0x6   :  { %14 = vsyncpa [#allocation6], 0 }
   0x7   :  { %16 = vsyncpa [#allocation6 + $0x1], 0 }
   0x8   :  { %17 = vsyncpa [#allocation9], 0 }
   0x9   :  { %18 = vsyncpa [#allocation4], 0 }
   0xa   :  { %20 = vsyncpa [#allocation4 + $0x1], 0  ;;  %s1772_s21 = smov 0   ;;  %s1774_s22 = smov 0  }
   0xb   :  { %s1776_s23 = smov 0   ;;  %s1778_s24 = smov 0  }
   0xc   :  { %s1780_s25 = smov 0   ;;  %s1782_s26 = smov 0  }
   0xd LB: > { %2201 = sst [smem:[#allocation16_spill]] %s1716_s23  ;;  %s1803_s27 = sadd.s32 4294967295, %s1728_s26   ;;  %s1728_s26 = sphi %s1782_s26, %s26_s26   ;;  %s1724_s25 = sphi %s1780_s25, %s2228_s25   ;;  %s1720_s24 = sphi %s1778_s24, %s2227_s24   ;;  %s1716_s23 = sphi %s1776_s23, %s2226_s23   ;;  %s1712_s22 = sphi %s1774_s22, %s2230_s22   ;;  %s1708_s21 = sphi %s1772_s21, %s2229_s21  }
   0xe   : > { %2202 = sst [smem:[#allocation17_spill]] %s1724_s25  ;;  %s1197_s28 = sadd.s32 4294967294, %s1728_s26  }
   0xf   : > { %p60_p0 = scmp.ne.s32.totalorder %s1712_s22, %s1708_s21  ;;  %p2188_p1 = scmp.eq.s32.totalorder %s1803_s27, 0 }
  0x10   : > { %p209_p3 = scmp.eq.s32.totalorder %s1197_s28, 1  ;;  %p1198_p5 = scmp.ge.s32.totalorder %s1728_s26, 1 }
  0x11   : > { %p1812_p4 = por %p2188_p1, %p60_p0  ;;  %p216_p7 = scmp.lt.s32.totalorder %s1728_s26, 3 }
  0x12   : > { %p1817_p6 = por %p209_p3, %p60_p0  ;;  %s1730_s8 = smov [#allocation7]  }
  0x13   : > { %s2203_s29 = scalar_select %p1812_p4, 1, 0 }
  0x14   : > { %s2204_s30 = scalar_select %p1817_p6, 1, 0 }
  0x15   : > { %p1822_p8 = pnand %p1198_p5, %p216_p7  ;;  %s228_s9 = sshll.u32 %s1730_s8, 4  ;;  %s1826_s9 = int_to_ptr.vmem [resolvable:$true] %s228_s9 }
  0x16   : > { %s1731_s11 = smov [#allocation8]   ;;  %s2207_s2 = sld [smem:[#allocation21_spill]] }
  0x17   : > { %p1378_p9 = pneg %p1822_p8  ;;  %s241_s12 = sshll.u32 %s1731_s11, 4  ;;  %s1837_s12 = int_to_ptr.vmem [resolvable:$true] %s241_s12 }
  0x19   : > { %p1833_p11 = pnand %p1378_p9, %p2188_p1 }
  0x1b   : > { %p1520_p13 = pneg %p1833_p11 }
  0x1c   : > { %s1518_s15 = scalar_lea.hbm %s2207_s2, 1024 }
  0x1d   : > { %p1519_p12 = scmp.ne.s32.totalorder %s2207_s2, %s1518_s15  ;;  %p1525_p5 = scmp.lt.u32.totalorder %s1518_s15, %s2207_s2 }
  0x1f   : > { %p1521_p0 = pnand %p1520_p13, %p1519_p12 }
  0x21   : > { %p1522_p3 = pneg %p1521_p0 }
  0x23   : > { %p1527_p7 = pnand %p1525_p5, %p1522_p3 }
  0x25   : > { %1530 = shalt.err (!%p1527_p7)
}
  0x26   : > { %s1531_s20 = scalar_lea.vmem %s1826_s9, 1024  ;;  %p1539_p2 = scmp.lt.s32.totalorder %s1826_s9, %s1826_s9 }
  0x27   : > { %p1532_p9 = scmp.ne.s32.totalorder %s1826_s9, %s1531_s20  ;;  %p1540_p12 = scmp.lt.s32.totalorder %s1531_s20, %s1531_s20 }
  0x29   : > { %p1534_p10 = pnand %p1532_p9, %p1520_p13  ;;  %p1541_p0 = por %p1540_p12, %p1539_p2 }
  0x2b   : > { %p1535_p1 = pneg %p1534_p10 }
  0x2d   : > { %p1542_p6 = pnand %p1541_p0, %p1535_p1 }
  0x2f   : > { %1545 = shalt.err (!%p1542_p6)
}
  0x30   : > { %s2189_s28 = smov 64   ;;  %s2191_s8 = smov 4  }
  0x31   : > { %1381 = dma.hbm_to_vmem [thread:$0]  (!%p1833_p11), %s2207_s2, 1024, %s1826_s9, [#allocation6], %s2189_s28, %s2189_s28, %s2191_s8  }
  0x32   : > { %s2208_s3 = sld [smem:[#allocation22_spill]] }
  0x38   : > { %s1546_s16 = scalar_lea.hbm %s2208_s3, 1024 }
  0x39   : > { %p1547_p1 = scmp.ne.s32.totalorder %s2208_s3, %s1546_s16  ;;  %p1553_p10 = scmp.lt.u32.totalorder %s1546_s16, %s2208_s3 }
  0x3b   : > { %p1549_p2 = pnand %p1547_p1, %p1520_p13 }
  0x3d   : > { %p1550_p6 = pneg %p1549_p2 }
  0x3f   : > { %p1555_p3 = pnand %p1553_p10, %p1550_p6 }
  0x41   : > { %1558 = shalt.err (!%p1555_p3)
}
  0x42   : > { %s1559_s9 = scalar_lea.vmem %s1837_s12, 1024  ;;  %p1567_p12 = scmp.lt.s32.totalorder %s1837_s12, %s1837_s12 }
  0x43   : > { %p1560_p5 = scmp.ne.s32.totalorder %s1837_s12, %s1559_s9  ;;  %p1568_p0 = scmp.lt.s32.totalorder %s1559_s9, %s1559_s9 }
  0x45   : > { %p1562_p7 = pnand %p1560_p5, %p1520_p13  ;;  %p1569_p1 = por %p1568_p0, %p1567_p12 }
  0x47   : > { %p1563_p9 = pneg %p1562_p7 }
  0x49   : > { %p1570_p2 = pnand %p1569_p1, %p1563_p9 }
  0x4b   : > { %1573 = shalt.err (!%p1570_p2)
}
  0x4c   : > { %1384 = dma.hbm_to_vmem [thread:$0]  (!%p1833_p11), %s2208_s3, 1024, %s1837_s12, [#allocation9], %s2189_s28, %s2189_s28, %s2191_s8  }
  0x4d   : > { %s38_s10 = sadd.s32 1, %s1724_s25  ;;  %s47_s14 = sadd.s32 1, %s1716_s23 }
  0x4e   : > { %p40_p13 = scmp.ge.s32.totalorder %s38_s10, 2  ;;  %p54_p6 = scmp.ne.s32.totalorder %s1716_s23, %s1712_s22 }
  0x4f   : > { %p55_p10 = scmp.eq.s32.totalorder %s1728_s26, 0  ;;  %p1398_p3 = scmp.lt.s32.totalorder %s1728_s26, 2 }
  0x50   : > { %s2232_s10 = smov (%p40_p13, %s38_s10), 0  ;;  %p2210_p7 = scmp.eq.s32.totalorder %s1803_s27, 1 }
  0x51   : > { %2209 = sst [smem:[#allocation18_spill]] %s2232_s10  ;;  %p56_p5 = por %p55_p10, %p54_p6 }
  0x52   : > { %p1907_p9 = por %p2210_p7, %p54_p6  ;;  %s42_s16 = ssub.s32 %s1724_s25, %s2232_s10 }
  0x53   : > { %s258_s17 = sand.u32 1, %s1716_s23   ;;  %p45_p12 = scmp.eq.s32.totalorder %s42_s16, 0 }
  0x54   : > { %s2211_s15 = scalar_select %p1907_p9, 1, 0 }
  0x55   : > { %s1914_s12 = sshll.u32 %s258_s17, 6  ;;  %s1250_s18 = sshll.u32 %s1724_s25, 10 }
  0x56   : > { %s1918_s19 = scalar_select %p45_p12, %s1716_s23, %s47_s14  }
  0x57   : > { %s2213_s0 = sld [smem:[#allocation20_spill]]  ;;  %s262_s13 = scalar_lea.vmem [#allocation2], %s1914_s12 }
  0x58   : > { %2212 = sst [smem:[#allocation19_spill]] %s1918_s19  ;;  %s271_s28 = sshll.u32 %s262_s13, 4  ;;  %s1932_s28 = int_to_ptr.vmem [resolvable:$true] %s271_s28 }
  0x59   : > { %p1928_p11 = pnand %p1398_p3, %p56_p5  ;;  %s1937_s20 = scalar_lea.hbm %s2182_s1, %s1250_s18 }
  0x5a   : > { %s1939_s9 = scalar_lea.sflag [#allocation3], %s258_s17 }
  0x5b   : > { %p1576_p1 = pneg %p1928_p11 }
  0x5d   : > { %s1923_s11 = scalar_lea.hbm %s2213_s0, %s1250_s18  ;;  %s1579_s10 = scalar_lea.hbm %s2213_s0, 2048 }
  0x5e   : > { %s1574_s2 = scalar_lea.hbm %s1923_s11, 1024  ;;  %p1580_p6 = scmp.lt.u32.totalorder %s1923_s11, %s2213_s0 }
  0x5f   : > { %p1575_p0 = scmp.ne.s32.totalorder %s1923_s11, %s1574_s2  ;;  %p1581_p10 = scmp.lt.u32.totalorder %s1579_s10, %s1574_s2 }
  0x60   : > { %p1583_p5 = scmp.lt.u32.totalorder %s1574_s2, %s1923_s11 }
  0x61   : > { %p1577_p2 = pnand %p1576_p1, %p1575_p0  ;;  %p1582_p3 = por %p1581_p10, %p1580_p6 }
  0x63   : > { %p1578_p13 = pneg %p1577_p2  ;;  %p1584_p7 = por %p1583_p5, %p1582_p3 }
  0x65   : > { %p1585_p12 = pnand %p1584_p7, %p1578_p13 }
  0x67   : > { %1588 = shalt.err (!%p1585_p12)
}
  0x68   : > { %s1589_s8 = scalar_lea.vmem %s1932_s28, 1024  ;;  %s1734_s3 = smov [#allocation2]  }
  0x69   : > { %p1590_p0 = scmp.ne.s32.totalorder %s1932_s28, %s1589_s8  ;;  %s1594_s17 = sshll.u32 %s1734_s3, 4  ;;  %s1595_s17 = int_to_ptr.vmem [resolvable:$false] %s1594_s17 }
  0x6a   : > { %s1596_s25 = scalar_lea.vmem %s1595_s17, 2048  ;;  %p1597_p4 = scmp.lt.s32.totalorder %s1932_s28, %s1595_s17 }
  0x6b   : > { %p1592_p2 = pnand %p1590_p0, %p1576_p1  ;;  %p1598_p6 = scmp.lt.s32.totalorder %s1596_s25, %s1589_s8 }
  0x6d   : > { %p1593_p9 = pneg %p1592_p2  ;;  %p1599_p10 = por %p1598_p6, %p1597_p4 }
  0x6f   : > { %p1600_p3 = pnand %p1599_p10, %p1593_p9 }
  0x71   : > { %1603 = shalt.err (!%p1600_p3)
}
  0x72   : > { %s2215_s2 = smov 4   ;;  %s2216_s10 = smov 64  }
  0x73   : > { %1388 = dma.hbm_to_vmem [thread:$0]  (!%p1928_p11), %s1923_s11, 1024, %s1932_s28, %s1939_s9, %s2216_s10, %s2216_s10, %s2215_s2  }
  0x74   : > { %s285_s18 = scalar_lea.vmem [#allocation5], %s1914_s12  ;;  %s281_s14 = sand.u32 1, %s1728_s26  }
  0x75   : > { %s294_s19 = sshll.u32 %s285_s18, 4  ;;  %s1974_s13 = scalar_lea.sflag [#allocation6], %s281_s14  ;;  %s1972_s19 = int_to_ptr.vmem [resolvable:$true] %s294_s19 }
  0x76   : > { %s1604_s8 = scalar_lea.hbm %s1937_s20, 1024  ;;  %s1609_s25 = scalar_lea.hbm %s2182_s1, 2048 }
  0x77   : > { %p1605_p4 = scmp.ne.s32.totalorder %s1937_s20, %s1604_s8  ;;  %p1610_p5 = scmp.lt.u32.totalorder %s1937_s20, %s2182_s1 }
  0x78   : > { %p1611_p7 = scmp.lt.u32.totalorder %s1609_s25, %s1604_s8  ;;  %p1613_p0 = scmp.lt.u32.totalorder %s1604_s8, %s1937_s20 }
  0x79   : > { %p1607_p9 = pnand %p1605_p4, %p1576_p1 }
  0x7a   : > { %p1612_p12 = por %p1611_p7, %p1610_p5 }
  0x7b   : > { %p1608_p13 = pneg %p1607_p9 }
  0x7c   : > { %p1614_p2 = por %p1613_p0, %p1612_p12 }
  0x7e   : > { %p1615_p6 = pnand %p1614_p2, %p1608_p13 }
  0x80   : > { %1618 = shalt.err (!%p1615_p6)
}
  0x81   : > { %s1619_s28 = scalar_lea.vmem %s1972_s19, 1024  ;;  %s1735_s12 = smov [#allocation5]  }
  0x82   : > { %p1620_p10 = scmp.ne.s32.totalorder %s1972_s19, %s1619_s28  ;;  %s1624_s11 = sshll.u32 %s1735_s12, 4  ;;  %s1625_s11 = int_to_ptr.vmem [resolvable:$false] %s1624_s11 }
  0x83   : > { %s1626_s0 = scalar_lea.vmem %s1625_s11, 2048  ;;  %p1627_p9 = scmp.lt.s32.totalorder %s1972_s19, %s1625_s11 }
  0x84   : > { %p1622_p3 = pnand %p1620_p10, %p1576_p1  ;;  %p1628_p5 = scmp.lt.s32.totalorder %s1626_s0, %s1619_s28 }
  0x86   : > { %p1623_p4 = pneg %p1622_p3  ;;  %p1629_p7 = por %p1628_p5, %p1627_p9 }
  0x88   : > { %p1630_p12 = pnand %p1629_p7, %p1623_p4 }
  0x8a   : > { %1633 = shalt.err (!%p1630_p12)
}
  0x8b   : > { %1391 = dma.hbm_to_vmem [thread:$0]  (!%p1928_p11), %s1937_s20, 1024, %s1972_s19, %s1974_s13, %s2216_s10, %s2216_s10, %s2215_s2  }
  0x8c   : > { %312 = sbr.rel (%p1822_p8) target bundleno = 611 (0x263), region = 44  ;;  %s2006_s23 = sand.u32 (!%p1822_p8), 1, %s1712_s22  }
  0x8d   : > { %s1209_s9 = sshll.u32 (!%p1822_p8), %s2006_s23, 6  ;;  %s315_s18 = scalar_lea.sflag (!%p1822_p8), [#allocation3], %s2006_s23 }
  0x8e   : > { %s2010_s14 = scalar_lea.vmem (!%p1822_p8), [#allocation2], %s1209_s9  ;;  %p2217_p1 = scmp.ne.s32.totalorder (!%p1822_p8), %s2203_s29, 0 }
  0x93   : > { %1687 = dma.done.wait (%p2217_p1), %s315_s18, 1024  }
  0x94   : > { %1689 = vsyncadd (%p2217_p1), %s315_s18, 4294966272  ;;  %s323_s16 = sand.u32 1, %s1803_s27   ;;  %s2017_s20 = scalar_lea.vmem [#allocation5], %s1209_s9 }
  0x95   : > { %s324_s7 = scalar_lea.sflag [#allocation6], %s323_s16 }
  0x96   : > { %1691 = dma.done.wait (%p2217_p1), %s324_s7, 1024  }
  0x97   : > { %1693 = vsyncadd (%p2217_p1), %s324_s7, 4294966272  ;;  %p2218_p8 = scmp.eq.s32.totalorder %s1803_s27, 0 }
  0x99   : > { %1695 = dma.done.wait (%p2218_p8), [#allocation6], 1024   ;;  %p2219_p11 = pmov %p2218_p8 }
  0x9a   : > { %p2220_p13 = pmov %p2218_p8 }
  0x9b   : > { %1697 = vsyncadd (%p2219_p11), [#allocation6], 4294966272 }
  0x9c   : > { %1699 = dma.done.wait (%p2220_p13), [#allocation9], 1024   ;;  %p2221_p0 = pmov %p2218_p8 }
  0x9d   : > { %v1454_v0 = vld [vmem:[#allocation8] sm:$0xff]   ;;  %v1456_v2 = vld [vmem:[#allocation8 + $0x8] sm:$0xff]   ;;  %v1458_v4 = vld [vmem:[#allocation8 + $0x10] sm:$0xff]   ;;  %p373_p2 = scmp.lt.s32.totalorder %s1720_s24, 1  ;;  %vm948_vm0 = vcmask 130112   ;;  %vm955_vm1 = vcmask 195712  }
  0x9e   : > { %1701 = vsyncadd (%p2221_p0), [#allocation9], 4294966272  ;;  %v1455_v1 = vld [vmem:[#allocation7] sm:$0xff]   ;;  %1284 = vmatprep.subr.bf16.mxu1 %v1454_v0  ;;  %v1457_v3 = vld [vmem:[#allocation7 + $0x8] sm:$0xff]   ;;  %vm962_vm2 = vcmask 261312   ;;  %vm969_vm3 = vcmask 326912  }
  0x9f   : > { %1316 = vmatprep.subr.bf16.mxu0 %v1455_v1  ;;  %1285 = vmatpush3.bf16.msra.mxu1 %v1454_v0  ;;  %v1459_v5 = vld [vmem:[#allocation7 + $0x10] sm:$0xff]   ;;  %v1460_v6 = vld [vmem:[#allocation8 + $0x18] sm:$0xff]   ;;  %v1462_v8 = vld [vmem:[#allocation8 + $0x20] sm:$0xff]   ;;  %s374_s27 = scalar_select %p373_p2, %s1720_s24, 1  ;;  %vm976_vm4 = vcmask 392512   ;;  %vm983_vm5 = vcmask 458112  }
  0xa0   : > { %1317 = vmatpush3.bf16.msra.mxu0 %v1455_v1  ;;  %1286 = vmatprep.subr.bf16.mxu1 %v1456_v2  ;;  %v1461_v7 = vld [vmem:[#allocation7 + $0x18] sm:$0xff]   ;;  %v1463_v9 = vld [vmem:[#allocation7 + $0x20] sm:$0xff]   ;;  %v1464_v10 = vld [vmem:[#allocation8 + $0x28] sm:$0xff]   ;;  %vm990_vm6 = vcmask 523712   ;;  %vm997_vm7 = vcmask 589312   ;;  %vm1004_vm8 = vcmask 654912  }
  0xa1   : > { %1318 = vmatprep.subr.bf16.mxu0 %v1457_v3  ;;  %v1465_v11 = vld [vmem:[#allocation7 + $0x28] sm:$0xff]   ;;  %v1470_v12 = vld [vmem:[%s2017_s20] sm:$0xff]   ;;  %v1466_v14 = vld [vmem:[#allocation8 + $0x30] sm:$0xff]   ;;  %s375_s10 = scalar_lea.vmem %s2185_s4, %s374_s27  ;;  %vm1011_vm9 = vcmask 720512   ;;  %vm1018_vm10 = vcmask 786112   ;;  %vm1025_vm11 = vcmask 851712  }
  0xa2   : > { %v1471_v13 = vld [vmem:[%s2010_s14] sm:$0xff]   ;;  %1300 = vmatprep.mubr.bf16.mxu1 %v1470_v12  ;;  %v1467_v15 = vld [vmem:[#allocation7 + $0x30] sm:$0xff]   ;;  %v1468_v16 = vld [vmem:[#allocation8 + $0x38] sm:$0xff]   ;;  %vm1032_vm12 = vcmask 917312   ;;  %vm1039_vm13 = vcmask 982912   ;;  %s1247_s8 = sshll.u32 %s1720_s24, 4 }
  0xa3   : > { %1287 = vmatpush3.bf16.msra.mxu1 %v1456_v2  ;;  %1332 = vmatprep.mubr.bf16.mxu0 %v1471_v13  ;;  %v1469_v17 = vld [vmem:[#allocation7 + $0x38] sm:$0xff]   ;;  %v1472_v18 = vld [vmem:[%s2017_s20 + $0x8] sm:$0xff]   ;;  %v1474_v20 = vld [vmem:[%s2017_s20 + $0x10] sm:$0xff]   ;;  %s370_s3 = scalar_lea.vmem [#allocation10], %s2006_s23  ;;  %vm1046_vm14 = vcmask 1048512   ;;  %s2132_s12 = scalar_lea.hbm %s2187_s6, %s1247_s8 }
  0xa4   : > { %1319 = vmatpush3.bf16.msra.mxu0 %v1457_v3  ;;  %1288 = vmatprep.subr.bf16.mxu1 %v1458_v4  ;;  %v1473_v19 = vld [vmem:[%s2010_s14 + $0x8] sm:$0xff]   ;;  %v1475_v21 = vld [vmem:[%s2010_s14 + $0x10] sm:$0xff]   ;;  %v1476_v22 = vld [vmem:[%s2017_s20 + $0x18] sm:$0xff]   ;;  %s1064_s17 = sshll.u32 %s370_s3, 4  ;;  %s1051_s11 = scalar_lea.sflag [#allocation4], %s2006_s23  ;;  %s2134_s17 = int_to_ptr.vmem [resolvable:$true] %s1064_s17 }
  0xa5   : > { %1320 = vmatprep.subr.bf16.mxu0 %v1459_v5  ;;  %v1477_v23 = vld [vmem:[%s2010_s14 + $0x18] sm:$0xff]   ;;  %v1478_v24 = vld [vmem:[%s2017_s20 + $0x20] sm:$0xff]   ;;  %v1480_v26 = vld [vmem:[%s2017_s20 + $0x28] sm:$0xff]   ;;  %s1634_s24 = scalar_lea.vmem %s2134_s17, 16  ;;  %p2222_p10 = scmp.ne.s32.totalorder %s2211_s15, 0 }
  0xa6   : > { %v1479_v25 = vld [vmem:[%s2010_s14 + $0x20] sm:$0xff]   ;;  %v1481_v27 = vld [vmem:[%s2010_s14 + $0x28] sm:$0xff]   ;;  %v1482_v28 = vld [vmem:[%s2017_s20 + $0x30] sm:$0xff]   ;;  %p1635_p6 = scmp.ne.s32.totalorder %s2134_s17, %s1634_s24  ;;  %s1736_s0 = smov [#allocation10]  }
  0xa7   : > { %1289 = vmatpush3.bf16.msra.mxu1 %v1458_v4  ;;  %v1483_v29 = vld [vmem:[%s2010_s14 + $0x30] sm:$0xff]   ;;  %v1484_v30 = vld [vmem:[%s2017_s20 + $0x38] sm:$0xff]   ;;  %v2052_v34 = vld [vmem:[%s375_s10] ss:$0 sm:$0xff]  ;;  %s1638_s9 = sshll.u32 %s1736_s0, 4  ;;  %s1639_s9 = int_to_ptr.vmem [resolvable:$false] %s1638_s9 }
  0xa8   : > { %1321 = vmatpush3.bf16.msra.mxu0 %v1459_v5  ;;  %1290 = vmatprep.subr.bf16.mxu1 %v1460_v6  ;;  %v1485_v31 = vld [vmem:[%s2010_s14 + $0x38] sm:$0xff]   ;;  %v2064_v0 = vld [vmem:[%s2186_s5] ss:$0 sm:$0xff]  ;;  %p1636_p3 = pnand %p1635_p6, %p2222_p10  ;;  %s1640_s18 = scalar_lea.vmem %s1639_s9, 32 }
  0xa9   : > { %1322 = vmatprep.subr.bf16.mxu0 %v1461_v7  ;;  %p1641_p9 = scmp.lt.s32.totalorder %s2134_s17, %s1639_s9  ;;  %p1642_p5 = scmp.lt.s32.totalorder %s1640_s18, %s1634_s24 }
  0xaa   : > { %p1637_p4 = pneg %p1636_p3 }
  0xab   : > { %1291 = vmatpush3.bf16.msra.mxu1 %v1460_v6  ;;  %p1643_p7 = por %p1642_p5, %p1641_p9 }
  0xac   : > { %1323 = vmatpush3.bf16.msra.mxu0 %v1461_v7  ;;  %1292 = vmatprep.subr.bf16.mxu1 %v1462_v8 }
  0xad   : > { %1324 = vmatprep.subr.bf16.mxu0 %v1463_v9  ;;  %p1644_p12 = pnand %p1643_p7, %p1637_p4 }
  0xaf   : > { %1293 = vmatpush3.bf16.msra.mxu1 %v1462_v8 }
  0xb0   : > { %1325 = vmatpush3.bf16.msra.mxu0 %v1463_v9  ;;  %1294 = vmatprep.subr.bf16.mxu1 %v1464_v10 }
  0xb1   : > { %1326 = vmatprep.subr.bf16.mxu0 %v1465_v11 }
  0xb3   : > { %1295 = vmatpush3.bf16.msra.mxu1 %v1464_v10 }
  0xb4   : > { %1327 = vmatpush3.bf16.msra.mxu0 %v1465_v11  ;;  %1296 = vmatprep.subr.bf16.mxu1 %v1466_v14 }
  0xb5   : > { %1328 = vmatprep.subr.bf16.mxu0 %v1467_v15 }
  0xb7   : > { %1297 = vmatpush3.bf16.msra.mxu1 %v1466_v14 }
  0xb8   : > { %1329 = vmatpush3.bf16.msra.mxu0 %v1467_v15  ;;  %1298 = vmatprep.subr.bf16.mxu1 %v1468_v16 }
  0xb9   : > { %1330 = vmatprep.subr.bf16.mxu0 %v1469_v17 }
  0xbb   : > { %1299 = vmatpush3.bf16.msra.mxu1 %v1468_v16 }
  0xbc   : > { %1331 = vmatpush3.bf16.msra.mxu0 %v1469_v17 }
  0xbe   : > { %1301 = vmatmul.mubr.bf16.vlgmr.msra.gmra.mrb[0].mxu1 %v1472_v18 }
  0xbf   : > { %1333 = vmatmul.mubr.bf16.vlgmr.msra.gmra.mrb[0].mxu0 %v1473_v19  ;;  %1304 = vmatprep.mubr.bf16.mxu1 %v1474_v20 }
  0xc0   : > { %1336 = vmatprep.mubr.bf16.mxu0 %v1475_v21 }
  0xc6   : > { %1305 = vmatmul.mubr.bf16.gmra.mrb[4].mxu1 %v1476_v22 }
  0xc7   : > { %1337 = vmatmul.mubr.bf16.gmra.mrb[4].mxu0 %v1477_v23  ;;  %1308 = vmatprep.mubr.bf16.mxu1 %v1478_v24 }
  0xc8   : > { %1340 = vmatprep.mubr.bf16.mxu0 %v1479_v25 }
  0xce   : > { %1309 = vmatmul.mubr.bf16.gmra.mrb[8].mxu1 %v1480_v26 }
  0xcf   : > { %1341 = vmatmul.mubr.bf16.gmra.mrb[8].mxu0 %v1481_v27  ;;  %1312 = vmatprep.mubr.bf16.mxu1 %v1482_v28 }
  0xd0   : > { %1344 = vmatprep.mubr.bf16.mxu0 %v1483_v29 }
  0xd6   : > { %1313 = vmatmul.mubr.bf16.gmra.mrb[12].mxu1 %v1484_v30 }
  0xd7   : > { %1345 = vmatmul.mubr.bf16.gmra.mrb[12].mxu0 %v1485_v31 }
 0x191   : > { %v1302_v32 = vpop.f32.mrb[0].mxu1 }
 0x192   : > { %v1334_v33 = vpop.f32.mrb[0].mxu0  ;;  %v571_v35 = vpop.f32.mrb[1].mxu1 }
 0x193   : > { %v773_v36 = vadd.f32 %v1334_v33, %v1302_v32  ;;  %v764_v37 = vpop.f32.mrb[1].mxu0  ;;  %v1303_v38 = vpop.f32.mrb[2].mxu1 }
 0x194   : > { %v765_v39 = vadd.f32 %v764_v37, %v571_v35  ;;  %v1335_v40 = vpop.f32.mrb[2].mxu0  ;;  %v574_v41 = vpop.f32.mrb[3].mxu1 }
 0x195   : > { %v836_v42 = vadd.f32 %v2052_v34, %v773_v36  ;;  %v776_v43 = vadd.f32 %v1335_v40, %v1303_v38  ;;  %v767_v44 = vpop.f32.mrb[3].mxu0 }
 0x196   : > { %v834_v45 = vadd.f32 %v2052_v34, %v765_v39  ;;  %v768_v46 = vadd.f32 %v767_v44, %v574_v41 }
 0x197   : > { %1486 = vtanh.f32 %v836_v42  ;;  %v837_v47 = vadd.f32 %v2052_v34, %v776_v43 }
 0x198   : > { %1488 = vtanh.f32 %v834_v45  ;;  %v835_v48 = vadd.f32 %v2052_v34, %v768_v46 }
 0x199   : > { %1490 = vtanh.f32 %v837_v47  ;;  %v1306_v49 = vpop.f32.mrb[4].mxu1 }
 0x19a   : > { %1492 = vtanh.f32 %v835_v48  ;;  %v1338_v50 = vpop.f32.mrb[4].mxu0  ;;  %v587_v51 = vpop.f32.mrb[5].mxu1 }
 0x19b   : > { %v789_v52 = vadd.f32 %v1338_v50, %v1306_v49  ;;  %v780_v53 = vpop.f32.mrb[5].mxu0  ;;  %v1307_v54 = vpop.f32.mrb[6].mxu1 }
 0x19c   : > { %v781_v55 = vadd.f32 %v780_v53, %v587_v51  ;;  %v1339_v56 = vpop.f32.mrb[6].mxu0  ;;  %v590_v57 = vpop.f32.mrb[7].mxu1 }
 0x19d   : > { %v840_v58 = vadd.f32 %v2052_v34, %v789_v52  ;;  %v792_v59 = vadd.f32 %v1339_v56, %v1307_v54  ;;  %v783_v60 = vpop.f32.mrb[7].mxu0 }
 0x19e   : > { %v838_v61 = vadd.f32 %v2052_v34, %v781_v55  ;;  %v784_v62 = vadd.f32 %v783_v60, %v590_v57 }
 0x19f   : > { %1494 = vtanh.f32 %v840_v58  ;;  %v841_v63 = vadd.f32 %v2052_v34, %v792_v59 }
 0x1a0   : > { %v839_v1 = vadd.f32 %v2052_v34, %v784_v62 }
 0x1a1   : > { %v1487_v2 = vpop.eup %1486  ;;  %1496 = vtanh.f32 %v841_v63  ;;  %v1310_v3 = vpop.f32.mrb[8].mxu1 }
 0x1a2   : > { %v1489_v4 = vpop.eup %1488  ;;  %1498 = vtanh.f32 %v838_v61  ;;  %v1342_v5 = vpop.f32.mrb[8].mxu0  ;;  %v875_v7 = vmul.f32 %v1487_v2, %v2064_v0 }
 0x1a3   : > { %v603_v6 = vpop.f32.mrb[9].mxu1  ;;  %v1491_v8 = vpop.eup %1490  ;;  %1500 = vtanh.f32 %v839_v1  ;;  %v805_v9 = vadd.f32 %v1342_v5, %v1310_v3  ;;  %v873_v12 = vmul.f32 %v1489_v4, %v2064_v0  ;;  %v937_v3 = vlaneseq }
 0x1a4   : > { %v796_v10 = vpop.f32.mrb[9].mxu0  ;;  %v1311_v11 = vpop.f32.mrb[10].mxu1  ;;  %893 = vadd.xlane.f32.xlu1 %v875_v7  ;;  %v876_v22 = vmul.f32 %v1491_v8, %v2064_v0 }
 0x1a5   : > { %v1493_v13 = vpop.eup %1492  ;;  %v797_v14 = vadd.f32 %v796_v10, %v603_v6  ;;  %v1343_v15 = vpop.f32.mrb[10].mxu0  ;;  %v844_v17 = vadd.f32 %v2052_v34, %v805_v9  ;;  %889 = vadd.xlane.f32.xlu0 %v873_v12  ;;  %v2091_v4 = vand.u32 127, %v937_v3  ;;  %v2094_v6 = vshrl.u32 %v937_v3, 7 }
 0x1a6   : > { %v606_v16 = vpop.f32.mrb[11].mxu1  ;;  %v808_v18 = vadd.f32 %v1343_v15, %v1311_v11  ;;  %v799_v19 = vpop.f32.mrb[11].mxu0  ;;  %v874_v24 = vmul.f32 %v1493_v13, %v2064_v0 }
 0x1a7   : > { %v842_v20 = vadd.f32 %v2052_v34, %v797_v14  ;;  %v800_v21 = vadd.f32 %v799_v19, %v606_v16  ;;  %1502 = vtanh.f32 %v844_v17  ;;  %v943_v5 = vadd.s32 4294967288, %v2091_v4 }
 0x1a8   : > { %v845_v23 = vadd.f32 %v2052_v34, %v808_v18  ;;  %895 = vadd.xlane.f32.xlu1 %v876_v22  ;;  %v950_v9 = vadd.s32 4294967280, %v2091_v4  ;;  %v941_v11 = vsub.s32 %v2091_v4, %v2094_v6  ;;  %v957_v12 = vadd.s32 4294967272, %v2091_v4 }
 0x1a9   : > { %v843_v25 = vadd.f32 %v2052_v34, %v800_v21  ;;  %v1495_v26 = vpop.eup %1494  ;;  %891 = vadd.xlane.f32.xlu0 %v874_v24  ;;  %v1314_v27 = vpop.f32.mrb[12].mxu1  ;;  %v946_v10 = vsub.s32 %v943_v5, %v2094_v6  ;;  %v964_v16 = vadd.s32 4294967264, %v2091_v4  ;;  %v971_v18 = vadd.s32 4294967256, %v2091_v4 }
 0x1aa   : > { %1504 = vtanh.f32 %v845_v23  ;;  %v1346_v28 = vpop.f32.mrb[12].mxu0  ;;  %v619_v29 = vpop.f32.mrb[13].mxu1  ;;  %v879_v30 = vmul.f32 %v1495_v26, %v2064_v0  ;;  %v953_v13 = vsub.s32 %v950_v9, %v2094_v6  ;;  %v960_v19 = vsub.s32 %v957_v12, %v2094_v6 }
 0x1ab   : > { %1506 = vtanh.f32 %v842_v20  ;;  %v1497_v31 = vpop.eup %1496  ;;  %v821_v32 = vadd.f32 %v1346_v28, %v1314_v27  ;;  %v812_v33 = vpop.f32.mrb[13].mxu0  ;;  %v978_v23 = vadd.s32 4294967248, %v2091_v4  ;;  %v974_v26 = vsub.s32 %v971_v18, %v2094_v6 }
 0x1ac   : > { %1508 = vtanh.f32 %v843_v25  ;;  %v1315_v35 = vpop.f32.mrb[14].mxu1  ;;  %v1499_v36 = vpop.eup %1498  ;;  %v813_v37 = vadd.f32 %v812_v33, %v619_v29  ;;  %v880_v40 = vmul.f32 %v1497_v31, %v2064_v0  ;;  %v967_v25 = vsub.s32 %v964_v16, %v2094_v6 }
 0x1ad   : > { %v1347_v38 = vpop.f32.mrb[14].mxu0  ;;  %v622_v39 = vpop.f32.mrb[15].mxu1  ;;  %v848_v42 = vadd.f32 %v2052_v34, %v821_v32  ;;  %901 = vadd.xlane.f32.xlu0 %v879_v30  ;;  %v877_v47 = vmul.f32 %v1499_v36, %v2064_v0  ;;  %v985_v29 = vadd.s32 4294967240, %v2091_v4  ;;  %v981_v31 = vsub.s32 %v978_v23, %v2094_v6 }
 0x1ae   : > { %v1501_v41 = vpop.eup %1500  ;;  %v824_v43 = vadd.f32 %v1347_v38, %v1315_v35  ;;  %v815_v44 = vpop.f32.mrb[15].mxu0  ;;  %v846_v45 = vadd.f32 %v2052_v34, %v813_v37  ;;  %903 = vadd.xlane.f32.xlu1 %v880_v40  ;;  %v992_v35 = vadd.s32 4294967232, %v2091_v4  ;;  %v999_v38 = vadd.s32 4294967224, %v2091_v4 }
 0x1af   : > { %v816_v46 = vadd.f32 %v815_v44, %v622_v39  ;;  %v878_v50 = vmul.f32 %v1501_v41, %v2064_v0  ;;  %v1006_v40 = vadd.s32 4294967216, %v2091_v4  ;;  %v988_v41 = vsub.s32 %v985_v29, %v2094_v6 }
 0x1b0   : > { %1510 = vtanh.f32 %v846_v45  ;;  %v849_v48 = vadd.f32 %v2052_v34, %v824_v43  ;;  %v1013_v44 = vadd.s32 4294967208, %v2091_v4 }
 0x1b1   : > { %v847_v49 = vadd.f32 %v2052_v34, %v816_v46  ;;  %v1503_v51 = vpop.eup %1502  ;;  %1512 = vtanh.f32 %v848_v42  ;;  %897 = vadd.xlane.f32.xlu0 %v877_v47  ;;  %v995_v47 = vsub.s32 %v992_v35, %v2094_v6 }
 0x1b2   : > { %899 = vadd.xlane.f32.xlu1 %v878_v50  ;;  %v883_v52 = vmul.f32 %v1503_v51, %v2064_v0  ;;  %v1009_v51 = vsub.s32 %v1006_v40, %v2094_v6 }
 0x1b3   : > { %1514 = vtanh.f32 %v847_v49  ;;  %v1002_v49 = vsub.s32 %v999_v38, %v2094_v6 }
 0x1b4   : > { %v1505_v53 = vpop.eup %1504  ;;  %1516 = vtanh.f32 %v849_v48  ;;  %v1020_v48 = vadd.s32 4294967200, %v2091_v4 }
 0x1b5   : > { %v1507_v54 = vpop.eup %1506  ;;  %v884_v55 = vmul.f32 %v1505_v53, %v2064_v0  ;;  %909 = vadd.xlane.f32.xlu0 %v883_v52  ;;  %v1027_v52 = vadd.s32 4294967192, %v2091_v4 }
 0x1b6   : > { %v1509_v56 = vpop.eup %1508  ;;  %v881_v57 = vmul.f32 %v1507_v54, %v2064_v0  ;;  %v1016_v54 = vsub.s32 %v1013_v44, %v2094_v6 }
 0x1b7   : > { %911 = vadd.xlane.f32.xlu1 %v884_v55  ;;  %v882_v34 = vmul.f32 %v1509_v56, %v2064_v0 }
 0x1b9   : > { %905 = vadd.xlane.f32.xlu0 %v881_v57 }
 0x1ba   : > { %v1511_v58 = vpop.eup %1510 }
 0x1bb   : > { %907 = vadd.xlane.f32.xlu1 %v882_v34  ;;  %v1513_v59 = vpop.eup %1512  ;;  %v885_v60 = vmul.f32 %v1511_v58, %v2064_v0  ;;  %v1023_v34 = vsub.s32 %v1020_v48, %v2094_v6  ;;  %v1034_v58 = vadd.s32 4294967184, %v2091_v4 }
 0x1bc   : > { %v887_v1 = vmul.f32 %v1513_v59, %v2064_v0 }
 0x1bd   : > { %v1515_v61 = vpop.eup %1514  ;;  %913 = vadd.xlane.f32.xlu0 %v885_v60  ;;  %v1037_v9 = vsub.s32 %v1034_v58, %v2094_v6 }
 0x1be   : > { %v886_v62 = vmul.f32 %v1515_v61, %v2064_v0  ;;  %v1517_v63 = vpop.eup %1516 }
 0x1bf   : > { %v888_v2 = vmul.f32 %v1517_v63, %v2064_v0  ;;  %v1030_v63 = vsub.s32 %v1027_v52, %v2094_v6 }
 0x1c0   : > { %915 = vadd.xlane.f32.xlu1 %v886_v62 }
 0x1c1   : > { %917 = vadd.xlane.f32.xlu0 %v887_v1  ;;  %v1041_v1 = vadd.s32 4294967176, %v2091_v4 }
 0x1c4   : > { %919 = vadd.xlane.f32.xlu1 %v888_v2 }
 0x231   : > { %v894_v7 = vpop.xlane.xlu1 %893 }
 0x232   : > { %v890_v8 = vpop.xlane.xlu0 %889  ;;  %v954_v22 = vrot.slane %v894_v7, %v953_v13  ;;  %v1044_v13 = vsub.s32 %v1041_v1, %v2094_v6 }
 0x233   : > { %v942_v17 = vrot.slane %v890_v8, %v941_v11 }
 0x235   : > { %v896_v14 = vpop.xlane.xlu1 %895 }
 0x236   : > { %v892_v0 = vpop.xlane.xlu0 %891  ;;  %v961_v28 = vrot.slane %v896_v14, %v960_v19 }
 0x237   : > { %v947_v15 = vrot.slane %v892_v0, %v946_v10 }
 0x239   : > { %v949_v20 = vsel %vm948_vm0, %v947_v15, %v942_v17 }
 0x23a   : > { %v902_v21 = vpop.xlane.xlu0 %901  ;;  %v956_v27 = vsel %vm955_vm1, %v954_v22, %v949_v20 }
 0x23b   : > { %v904_v24 = vpop.xlane.xlu1 %903  ;;  %v963_v36 = vsel %vm962_vm2, %v961_v28, %v956_v27  ;;  %v982_v45 = vrot.slane %v902_v21, %v981_v31 }
 0x23c   : > { %v989_v53 = vrot.slane %v904_v24, %v988_v41 }
 0x23e   : > { %v898_v30 = vpop.xlane.xlu0 %897 }
 0x23f   : > { %v968_v32 = vrot.slane %v898_v30, %v967_v25  ;;  %v900_v33 = vpop.xlane.xlu1 %899 }
 0x240   : > { %v975_v37 = vrot.slane %v900_v33, %v974_v26 }
 0x241   : > { %v970_v39 = vsel %vm969_vm3, %v968_v32, %v963_v36 }
 0x242   : > { %v977_v42 = vsel %vm976_vm4, %v975_v37, %v970_v39  ;;  %v910_v43 = vpop.xlane.xlu0 %909 }
 0x243   : > { %v984_v50 = vsel %vm983_vm5, %v982_v45, %v977_v42  ;;  %v1010_v61 = vrot.slane %v910_v43, %v1009_v51 }
 0x244   : > { %v912_v46 = vpop.xlane.xlu1 %911  ;;  %v991_v59 = vsel %vm990_vm6, %v989_v53, %v984_v50 }
 0x245   : > { %v1017_v2 = vrot.slane %v912_v46, %v1016_v54 }
 0x246   : > { %v906_v55 = vpop.xlane.xlu0 %905 }
 0x247   : > { %v996_v56 = vrot.slane %v906_v55, %v995_v47 }
 0x248   : > { %v908_v57 = vpop.xlane.xlu1 %907 }
 0x249   : > { %v1003_v60 = vrot.slane %v908_v57, %v1002_v49  ;;  %v998_v62 = vsel %vm997_vm7, %v996_v56, %v991_v59 }
 0x24a   : > { %v914_v5 = vpop.xlane.xlu0 %913 }
 0x24b   : > { %v1005_v3 = vsel %vm1004_vm8, %v1003_v60, %v998_v62  ;;  %v1024_v8 = vrot.slane %v914_v5, %v1023_v34 }
 0x24c   : > { %v1012_v7 = vsel %vm1011_vm9, %v1010_v61, %v1005_v3 }
 0x24d   : > { %v1019_v10 = vsel %vm1018_vm10, %v1017_v2, %v1012_v7  ;;  %v916_v11 = vpop.xlane.xlu1 %915 }
 0x24e   : > { %v1026_v12 = vsel %vm1025_vm11, %v1024_v8, %v1019_v10  ;;  %v1031_v0 = vrot.slane %v916_v11, %v1030_v63  ;;  %v918_v4 = vpop.xlane.xlu0 %917 }
 0x24f   : > { %v1038_v15 = vrot.slane %v918_v4, %v1037_v9 }
 0x250   : > { %v1033_v14 = vsel %vm1032_vm12, %v1031_v0, %v1026_v12 }
 0x251   : > { %v920_v16 = vpop.xlane.xlu1 %919  ;;  %v1040_v17 = vsel %vm1039_vm13, %v1038_v15, %v1033_v14 }
 0x252   : > { %v1045_v18 = vrot.slane %v920_v16, %v1044_v13 }
 0x254   : > { %v1047_v6 = vsel %vm1046_vm14, %v1045_v18, %v1040_v17 }
 0x255   : > { %1049 = vst [vmem:[%s370_s3] sm:$0x1] %v1047_v6 }
 0x256   : > { %1647 = shalt.err (!%p1644_p12)
}
 0x257   : > { %s1648_s23 = scalar_lea.hbm %s2132_s12, 16  ;;  %s1652_s7 = scalar_lea.hbm %s2187_s6, 32 }
 0x258   : > { %p1649_p1 = scmp.ne.s32.totalorder %s2132_s12, %s1648_s23  ;;  %p1653_p13 = scmp.lt.u32.totalorder %s2132_s12, %s2187_s6 }
 0x259   : > { %p1654_p0 = scmp.lt.u32.totalorder %s1652_s7, %s1648_s23  ;;  %p1656_p6 = scmp.lt.u32.totalorder %s1648_s23, %s2132_s12 }
 0x25a   : > { %p1650_p8 = pnand %p1649_p1, %p2222_p10 }
 0x25b   : > { %p1655_p2 = por %p1654_p0, %p1653_p13 }
 0x25c   : > { %p1651_p11 = pneg %p1650_p8 }
 0x25d   : > { %p1657_p3 = por %p1656_p6, %p1655_p2 }
 0x25f   : > { %p1658_p4 = pnand %p1657_p3, %p1651_p11 }
 0x261   : > { %1661 = shalt.err (!%p1658_p4)
}
 0x262   : > { %1376 = dma.vmem_to_hbm [thread:$0]  (%p2222_p10), %s2134_s17, 16, %s2132_s12, %s1051_s11  }
 0x263 PF: > { %s1076_s29 = sand.u32 1, %s1708_s21   ;;  %p2223_p9 = scmp.ne.s32.totalorder %s2204_s30, 0 }
 0x264   : > { %p2224_p5 = scmp.ge.s32.totalorder %s1728_s26, 2  ;;  %s1077_s2 = scalar_lea.sflag [#allocation4], %s1076_s29 }
 0x266   : > { %p1393_p7 = pnand %p2224_p5, %p2223_p9 }
 0x268   : > { %1703 = dma.done.wait (!%p1393_p7), %s1077_s2, 16  }
 0x269   : > { %1705 = vsyncadd (!%p1393_p7), %s1077_s2, 4294967280  ;;  %s26_s26 = sadd.s32 1, %s1728_s26   ;;  %s2225_s10 = sld [smem:[#allocation16_spill]] }
 0x26a   : > { %p23_p12 = scmp.ge.s32.totalorder %s26_s26, 4   ;;  %s2226_s23 = sld [smem:[#allocation19_spill]] }
 0x26b   : > { %s2227_s24 = sld [smem:[#allocation17_spill]]  ;;  %s2228_s25 = sld [smem:[#allocation18_spill]] }
 0x26c   : > { %s2229_s21 = smov %s1712_s22  ;;  %25 = sbr.rel (!%p23_p12) target bundleno = 13 (0xd), region = 113 }
 0x26f   : > { %s2230_s22 = smov %s2225_s10 }
 0x273   :  { %1081 = vsyncpa [#allocation3], 1 }
 0x274   :  { %1083 = vsyncpa [#allocation3 + $0x1], 1 }
 0x275   :  { %1084 = vsyncpa [#allocation6], 1 }
 0x276   :  { %1086 = vsyncpa [#allocation6 + $0x1], 1 }
 0x277   :  { %1087 = vsyncpa [#allocation9], 1 }
 0x278   :  { %1088 = vsyncpa [#allocation4], 1 }
 0x279   :  { %1090 = vsyncpa [#allocation4 + $0x1], 1 }

</bundles_post_ra>
